<compile_context>
chip_gen: v5e
topology: v5e:2x2
jax: 0.10.0
libtpu: 0.0.40
codegen_flags: <defaults>
</compile_context>

<pallas_src>
import functools

import jax
import jax.numpy as jnp
from jax.experimental import pallas as pl
from jax.experimental.pallas import tpu as pltpu

COMPUTE_DTYPE = jnp.bfloat16   # stands in for torch.float16 compute_dtype
TRAIN_DTYPE = jnp.float32      # torch.float train_dtype (LoRA params at rest)


def _round_up(a, b):
    return (a + b - 1) // b * b


def _hqq_lora_kernel(x_ref, wt_ref, xa_ref, b_ref, bias_ref, o_ref, acc_ref):
    k = pl.program_id(2)

    @pl.when(k == 0)
    def _():
        # Accumulator init = bias + LoRA stage 2 (scaling pre-folded into B).
        # bias_ref is (1, tn) f32 and broadcasts over the (tm, tn) dot result.
        acc_ref[...] = bias_ref[...] + jnp.dot(
            xa_ref[...], b_ref[...], preferred_element_type=jnp.float32)

    # Base dense matmul: acc += x @ W^T   (bf16 operands, f32 accumulation).
    acc_ref[...] += jnp.dot(x_ref[...], wt_ref[...],
                            preferred_element_type=jnp.float32)

    @pl.when(k == pl.num_programs(2) - 1)
    def _():
        o_ref[...] = acc_ref[...].astype(o_ref.dtype)


def prepare_hqq_lora_params(w_t, lora_a, lora_b, bias, scaling, *, tn=1024, tk=512):
    """One-time (model-load) operand prep; NOT per forward call.

    w_t:    [in_features, out_features]  base weight stored transposed (W^T)
    lora_a: [in_features, r]
    lora_b: [r, out_features]
    bias:   [out_features] or None
    """
    in_features, out_features = w_t.shape
    r = lora_a.shape[1]

    tk = min(tk, _round_up(in_features, 128))
    tn = min(tn, _round_up(out_features, 128))
    r_pad = _round_up(max(r, 1), 128)          # lane-dense rank dim
    k_pad = _round_up(in_features, tk)
    n_pad = _round_up(out_features, tn)

    wt_p = jnp.pad(w_t.astype(COMPUTE_DTYPE),
                   ((0, k_pad - in_features), (0, n_pad - out_features)))
    a_f32 = lora_a.astype(TRAIN_DTYPE)         # used by the wrapper stage-1 GEMM
    # Fold the LoRA scaling into lora_B once, here (removes in-kernel multiply).
    b_p = jnp.pad(lora_b.astype(jnp.float32) * jnp.float32(scaling),
                  ((0, r_pad - r), (0, n_pad - out_features))).astype(COMPUTE_DTYPE)
    if bias is None:
        bias_f32 = jnp.zeros((out_features,), jnp.float32)
    else:
        bias_f32 = bias.astype(jnp.float32)
    bias_p = jnp.pad(bias_f32, (0, n_pad - out_features)).reshape(1, n_pad)

    jax.block_until_ready((wt_p, a_f32, b_p, bias_p))   # materialize up front
    return dict(wt_p=wt_p, a_f32=a_f32, b_p=b_p, bias_p=bias_p,
                out_features=out_features, tn=tn, tk=tk, r_pad=r_pad)


@functools.partial(jax.jit,
                   static_argnames=("out_features", "tn", "tk", "r_pad", "tm_max"))
def _forward_2d(x2d, wt_p, a_f32, b_p, bias_p, *,
                out_features, tn, tk, r_pad, tm_max):
    m, in_features = x2d.shape
    k_pad, n_pad = wt_p.shape

    tm = min(tm_max, _round_up(m, 16))          # bf16 sublane packing (16 rows)
    m_pad = _round_up(m, tm)

    x_bf16 = x2d.astype(COMPUTE_DTYPE)

    # LoRA stage 1 in the train dtype (f32), as torch does: tiny (M x K x r)
    # GEMM hoisted out of the kernel -> lora_A never re-streamed per N tile and
    # no cross-j dependence in the kernel (so j can be megacore-parallel).
    xa = jnp.dot(x_bf16.astype(TRAIN_DTYPE), a_f32)                  # (M, r) f32
    xa_p = jnp.pad(xa, ((0, m_pad - m), (0, r_pad - xa.shape[1]))).astype(COMPUTE_DTYPE)

    x_p = jnp.pad(x_bf16, ((0, m_pad - m), (0, k_pad - in_features)))

    grid = (m_pad // tm, n_pad // tn, k_pad // tk)

    # Decode-shaped call (single M tile, several W^T tiles): deepen the W^T
    # pipeline to 3 buffers so the HBM stream stays ahead of the short MXU work.
    w_bufs = 3 if (grid[0] == 1 and grid[1] * grid[2] >= 3) else 2
    if w_bufs == 2:
        wt_spec = pl.BlockSpec((tk, tn), lambda i, j, k: (k, j))
    else:
        wt_spec = pl.BlockSpec((tk, tn), lambda i, j, k: (k, j),
                               pipeline_mode=pl.Buffered(w_bufs))

    # VMEM budget (incl. double buffering) -> scoped-VMEM limit, capped at
    # 64 MiB so it also stays valid on v7x's smaller physical VMEM.
    est = (2 * tm * tk * 2          # x (bf16, double buffered)
           + w_bufs * tk * tn * 2   # W^T
           + 2 * tm * r_pad * 2     # x @ lora_A
           + 2 * r_pad * tn * 2     # lora_B * scaling
           + 2 * tn * 4             # bias (f32)
           + 2 * tm * tn * 2        # output
           + tm * tn * 4)           # f32 accumulator scratch
    vmem_limit = int(min(max(est * 3 // 2 + (2 << 20), 32 << 20), 64 << 20))

    out = pl.pallas_call(
        _hqq_lora_kernel,
        out_shape=jax.ShapeDtypeStruct((m_pad, n_pad), COMPUTE_DTYPE),
        grid_spec=pltpu.PrefetchScalarGridSpec(
            num_scalar_prefetch=0,
            grid=grid,
            in_specs=[
                pl.BlockSpec((tm, tk), lambda i, j, k: (i, k)),      # x
                wt_spec,                                             # W^T
                pl.BlockSpec((tm, r_pad), lambda i, j, k: (i, 0)),   # x @ lora_A
                pl.BlockSpec((r_pad, tn), lambda i, j, k: (0, j)),   # lora_B*scaling
                pl.BlockSpec((1, tn), lambda i, j, k: (0, j)),       # bias (f32)
            ],
            out_specs=pl.BlockSpec((tm, tn), lambda i, j, k: (i, j)),
            scratch_shapes=[pltpu.VMEM((tm, tn), jnp.float32)],      # f32 accumulator
        ),
        compiler_params=pltpu.CompilerParams(
            dimension_semantics=("parallel", "parallel", "arbitrary"),
            vmem_limit_bytes=vmem_limit),
    )(x_p, wt_p, xa_p, b_p, bias_p)

    return out[:m, :out_features]


def hqq_linear_lora_forward(x, params, *, tm=512):
    """HQQLinearLoRA.forward.

    x: [..., in_features]  (any dtype; cast to the compute dtype)
    params: output of prepare_hqq_lora_params (cached at model-load time)
    Returns [..., out_features] in COMPUTE_DTYPE.
    """
    orig_shape = x.shape
    x2d = x.reshape(-1, orig_shape[-1])
    out2d = _forward_2d(
        x2d, params["wt_p"], params["a_f32"], params["b_p"], params["bias_p"],
        out_features=params["out_features"], tn=params["tn"], tk=params["tk"],
        r_pad=params["r_pad"], tm_max=tm)
    return out2d.reshape(orig_shape[:-1] + (params["out_features"],))


def _reference(x2d, w_t, lora_a, lora_b, bias, scaling):
    # Same math as the torch forward, with the kernel's rounding order
    # (f32 accumulation, single final cast to the compute dtype).
    x = x2d.astype(COMPUTE_DTYPE).astype(jnp.float32)
    out = jnp.dot(x, w_t.astype(jnp.float32))
    out = out + jnp.dot(jnp.dot(x, lora_a.astype(jnp.float32)),
                        lora_b.astype(jnp.float32)) * scaling
    if bias is not None:
        out = out + bias.astype(jnp.float32)
    return out.astype(COMPUTE_DTYPE)


if __name__ == "__main__":
    # Small shapes implied by the module; tiles chosen so both a multi-tile
    # grid and a decode-shaped (single-M-tile, Buffered(3)) grid are exercised.
    batch, seq = 2, 35                  # M = 70 -> padded
    in_features, out_features = 256, 320
    r = 8
    lora_alpha = 16
    scaling = lora_alpha / r            # 2.0

    key = jax.random.PRNGKey(0)
    kx, kw, ka, kb, kbias = jax.random.split(key, 5)

    x = jax.random.normal(kx, (batch, seq, in_features), dtype=jnp.float32)
    # base linear weight stored transposed [in, out] in compute dtype (no bias)
    w_t = (jax.random.normal(kw, (in_features, out_features), dtype=jnp.float32)
           * 0.03).astype(COMPUTE_DTYPE)
    # LoRA params in train dtype (seed both nonzero to exercise the LoRA path)
    bound = 1.0 / (in_features ** 0.5)
    lora_a = jax.random.uniform(ka, (in_features, r), minval=-bound, maxval=bound,
                                dtype=TRAIN_DTYPE)
    lora_b = jax.random.normal(kb, (r, out_features), dtype=TRAIN_DTYPE) * 0.05
    bias = jax.random.normal(kbias, (out_features,), dtype=TRAIN_DTYPE) * 0.1

    x2d = x.reshape(-1, in_features)
    ref = _reference(x2d, w_t, lora_a, lora_b, bias,
                     scaling).reshape(batch, seq, out_features)

    # --- Test 1: multi-tile grid (3, 3, 2), both M and N axes parallel, with bias.
    params_small = prepare_hqq_lora_params(w_t, lora_a, lora_b, bias, scaling,
                                           tn=128, tk=128)
    out = jax.block_until_ready(hqq_linear_lora_forward(x, params_small, tm=32))
    assert out.shape == (batch, seq, out_features)
    assert out.dtype == COMPUTE_DTYPE
    err = jnp.max(jnp.abs(out.astype(jnp.float32) - ref.astype(jnp.float32)))
    assert float(err) < 5e-2, f"max abs err {float(err)}"

    # --- Test 2: decode-shaped grid (1, 3, 2) -> Buffered(3) W^T pipeline; bias=None.
    params_small_nb = prepare_hqq_lora_params(w_t, lora_a, lora_b, None, scaling,
                                              tn=128, tk=128)
    out_nb = jax.block_until_ready(hqq_linear_lora_forward(x, params_small_nb))
    ref_nb = _reference(x2d, w_t, lora_a, lora_b, None,
                        scaling).reshape(batch, seq, out_features)
    err_nb = jnp.max(jnp.abs(out_nb.astype(jnp.float32)
                             - ref_nb.astype(jnp.float32)))
    assert float(err_nb) < 5e-2, f"max abs err (no bias) {float(err_nb)}"

    # --- Test 3: production-default tiles (clamped by the small shapes), with bias.
    params_def = prepare_hqq_lora_params(w_t, lora_a, lora_b, bias, scaling)
    out_def = jax.block_until_ready(hqq_linear_lora_forward(x, params_def))
    err_def = jnp.max(jnp.abs(out_def.astype(jnp.float32)
                              - ref.astype(jnp.float32)))
    assert float(err_def) < 5e-2, f"max abs err (default tiles) {float(err_def)}"

    print("KERNEL_OK")
</pallas_src>

<mosaic_0001>
module attributes {stable_mosaic.version = 11 : i64} {
  func.func @_hqq_lora_kernel(%arg0: i32, %arg1: i32, %arg2: i32, %arg3: memref<32x128xbf16, #tpu.memory_space<vmem>>, %arg4: memref<128x128xbf16, #tpu.memory_space<vmem>>, %arg5: memref<32x128xbf16, #tpu.memory_space<vmem>>, %arg6: memref<128x128xbf16, #tpu.memory_space<vmem>>, %arg7: memref<1x128xf32, #tpu.memory_space<vmem>>, %arg8: memref<32x128xbf16, #tpu.memory_space<vmem>>, %arg9: memref<32x128xf32, #tpu.memory_space<vmem>>) attributes {dimension_semantics = [#tpu.dimension_semantics<parallel>, #tpu.dimension_semantics<parallel>, #tpu.dimension_semantics<arbitrary>], iteration_bounds = array<i64: 3, 3, 2>, scalar_prefetch = 0 : i64, scratch_operands = 1 : i64, tpu.core_type = #tpu.core_type<tc>, window_params = [{transform_indices = @transform_0, window_bounds = array<i64: 32, 128>}, {transform_indices = @transform_1, window_bounds = array<i64: 128, 128>}, {transform_indices = @transform_2, window_bounds = array<i64: 32, 128>}, {transform_indices = @transform_3, window_bounds = array<i64: 128, 128>}, {transform_indices = @transform_4, window_bounds = array<i64: 1, 128>}, {transform_indices = @transform_5, window_bounds = array<i64: 32, 128>}]} {
    %c0_i32 = arith.constant 0 : i32
    %0 = arith.cmpi eq, %arg2, %c0_i32 : i32
    %1 = arith.extui %0 : i1 to i32
    %c0_i32_0 = arith.constant 0 : i32
    %2 = arith.cmpi ne, %1, %c0_i32_0 : i32
    scf.if %2 {
      %c0_9 = arith.constant 0 : index
      %c0_10 = arith.constant 0 : index
      %12 = vector.load %arg7[%c0_9, %c0_10] : memref<1x128xf32, #tpu.memory_space<vmem>>, vector<1x128xf32>
      %c0_11 = arith.constant 0 : index
      %c0_12 = arith.constant 0 : index
      %13 = vector.load %arg5[%c0_11, %c0_12] : memref<32x128xbf16, #tpu.memory_space<vmem>>, vector<32x128xbf16>
      %c0_13 = arith.constant 0 : index
      %c0_14 = arith.constant 0 : index
      %14 = vector.load %arg6[%c0_13, %c0_14] : memref<128x128xbf16, #tpu.memory_space<vmem>>, vector<128x128xbf16>
      %cst_15 = arith.constant dense<0.000000e+00> : vector<32x128xf32>
      %15 = tpu.matmul %13, %14, %cst_15 {dimension_numbers = #tpu.dot_dimension_numbers<[1], [0], [0], [1], [0, 0, 1, 1], [], []>} : vector<32x128xbf16>, vector<128x128xbf16>, vector<32x128xf32> -> vector<32x128xf32>
      %16 = vector.broadcast %12 : vector<1x128xf32> to vector<32x128xf32>
      %17 = arith.addf %16, %15 : vector<32x128xf32>
      %c0_16 = arith.constant 0 : index
      %c0_17 = arith.constant 0 : index
      %18 = vector.load %arg9[%c0_16, %c0_17] : memref<32x128xf32, #tpu.memory_space<vmem>>, vector<32x128xf32>
      tpu.vector_store %arg9[%c0_16, %c0_17], %17 {strides = array<i32>} : memref<32x128xf32, #tpu.memory_space<vmem>>, vector<32x128xf32>,
    } else {
    }
    %c0 = arith.constant 0 : index
    %c0_1 = arith.constant 0 : index
    %3 = vector.load %arg9[%c0, %c0_1] : memref<32x128xf32, #tpu.memory_space<vmem>>, vector<32x128xf32>
    %c0_2 = arith.constant 0 : index
    %c0_3 = arith.constant 0 : index
    %4 = vector.load %arg3[%c0_2, %c0_3] : memref<32x128xbf16, #tpu.memory_space<vmem>>, vector<32x128xbf16>
    %c0_4 = arith.constant 0 : index
    %c0_5 = arith.constant 0 : index
    %5 = vector.load %arg4[%c0_4, %c0_5] : memref<128x128xbf16, #tpu.memory_space<vmem>>, vector<128x128xbf16>
    %cst = arith.constant dense<0.000000e+00> : vector<32x128xf32>
    %6 = tpu.matmul %4, %5, %cst {dimension_numbers = #tpu.dot_dimension_numbers<[1], [0], [0], [1], [0, 0, 1, 1], [], []>} : vector<32x128xbf16>, vector<128x128xbf16>, vector<32x128xf32> -> vector<32x128xf32>
    %7 = arith.addf %3, %6 : vector<32x128xf32>
    %c0_6 = arith.constant 0 : index
    %c0_7 = arith.constant 0 : index
    %8 = vector.load %arg9[%c0_6, %c0_7] : memref<32x128xf32, #tpu.memory_space<vmem>>, vector<32x128xf32>
    tpu.vector_store %arg9[%c0_6, %c0_7], %7 {strides = array<i32>} : memref<32x128xf32, #tpu.memory_space<vmem>>, vector<32x128xf32>,
    %c1_i32 = arith.constant 1 : i32
    %9 = arith.cmpi eq, %arg2, %c1_i32 : i32
    %10 = arith.extui %9 : i1 to i32
    %c0_i32_8 = arith.constant 0 : i32
    %11 = arith.cmpi ne, %10, %c0_i32_8 : i32
    scf.if %11 {
      %c0_9 = arith.constant 0 : index
      %c0_10 = arith.constant 0 : index
      %12 = vector.load %arg9[%c0_9, %c0_10] : memref<32x128xf32, #tpu.memory_space<vmem>>, vector<32x128xf32>
      %13 = arith.truncf %12 : vector<32x128xf32> to vector<32x128xbf16>
      %c0_11 = arith.constant 0 : index
      %c0_12 = arith.constant 0 : index
      %14 = vector.load %arg8[%c0_11, %c0_12] : memref<32x128xbf16, #tpu.memory_space<vmem>>, vector<32x128xbf16>
      tpu.vector_store %arg8[%c0_11, %c0_12], %13 {strides = array<i32>} : memref<32x128xbf16, #tpu.memory_space<vmem>>, vector<32x128xbf16>,
    } else {
    }
    return
  }
  func.func @transform_0(%arg0: i32, %arg1: i32, %arg2: i32) -> (i32, i32) {
    %c0_i32 = arith.constant 0 : i32
    return %arg0, %arg2 : i32, i32
  }
  func.func @transform_1(%arg0: i32, %arg1: i32, %arg2: i32) -> (i32, i32) {
    %c0_i32 = arith.constant 0 : i32
    return %arg2, %arg1 : i32, i32
  }
  func.func @transform_2(%arg0: i32, %arg1: i32, %arg2: i32) -> (i32, i32) {
    %c0_i32 = arith.constant 0 : i32
    %c0_i32_0 = arith.constant 0 : i32
    return %arg0, %c0_i32 : i32, i32
  }
  func.func @transform_3(%arg0: i32, %arg1: i32, %arg2: i32) -> (i32, i32) {
    %c0_i32 = arith.constant 0 : i32
    %c0_i32_0 = arith.constant 0 : i32
    return %c0_i32, %arg1 : i32, i32
  }
  func.func @transform_4(%arg0: i32, %arg1: i32, %arg2: i32) -> (i32, i32) {
    %c0_i32 = arith.constant 0 : i32
    %c0_i32_0 = arith.constant 0 : i32
    return %c0_i32, %arg1 : i32, i32
  }
  func.func @transform_5(%arg0: i32, %arg1: i32, %arg2: i32) -> (i32, i32) {
    %c0_i32 = arith.constant 0 : i32
    return %arg0, %arg1 : i32, i32
  }
}

</mosaic_0001>

<bundles_post_ra>
// kernel: _forward_2d.1
= control target key start
LH: loop header
LB: loop body
LE: loop exit
PB: predicated region body
PF: predicated region fallthrough
CT: control target
= control target key end

     0   :  { %s1774_s0 = inlined_call_operand.vmem [shape: bf16[96,256], index: 0, kind: input, shape index: {}]   ;;  %s1775_s1 = inlined_call_operand.vmem [shape: bf16[256,384], index: 1, kind: input, shape index: {}]   ;;  %s1776_s2 = inlined_call_operand.vmem [shape: bf16[96,128], index: 2, kind: input, shape index: {}]   ;;  %s1777_s3 = inlined_call_operand.vmem [shape: bf16[128,384], index: 3, kind: input, shape index: {}]   ;;  %s1778_s4 = inlined_call_operand.vmem [shape: f32[1,384], index: 4, kind: input, shape index: {}]   ;;  %s1779_s5 = inlined_call_operand.vmem [shape: bf16[96,384], index: 5, kind: output, shape index: {}]  }
   0x1   :  { %1785 = sst [smem:[#allocation15_spill]] %s1774_s0 }
   0x2   :  { %1786 = sst [smem:[#allocation16_spill]] %s1775_s1 }
   0x3   :  { %1787 = sst [smem:[#allocation17_spill]] %s1776_s2 }
   0x4   :  { %1788 = sst [smem:[#allocation18_spill]] %s1777_s3 }
   0x5   :  { %1789 = sst [smem:[#allocation19_spill]] %s1778_s4 }
   0x6   :  { %1790 = sst [smem:[#allocation20_spill]] %s1779_s5 }
   0x7   :  { %s1464_s18 = smov 0   ;;  %s1466_s19 = smov 0  }
   0x8   :  { %s1468_s20 = smov 0   ;;  %s1470_s21 = smov 0  }
   0x9   :  { %s1472_s22 = smov 0   ;;  %s1474_s23 = smov 0  }
   0xa   :  { %s1476_s24 = smov 0   ;;  %s1478_s25 = smov 0  }
   0xb   :  { %s1480_s26 = smov 0   ;;  %s1482_s27 = smov 0  }
   0xc   :  { %s1484_s28 = smov 0   ;;  %s1486_s29 = smov 0  }
   0xd   :  { %s1488_s30 = smov 0   ;;  %s1490_s6 = smov 0  }
   0xe   :  { %s1492_s7 = smov 0  }
   0xf LB: > { %1791 = sst [smem:[#allocation7_spill]] %s1408_s26  ;;  %s27_s9 = sadd.s32 1, %s1420_s29  ;;  %s1432_s7 = sphi %s1492_s7, %s15_s7   ;;  %s1428_s6 = sphi %s1490_s6, %s1822_s6   ;;  %s1424_s30 = sphi %s1488_s30, %s1834_s30   ;;  %s1420_s29 = sphi %s1486_s29, %s1833_s29   ;;  %s1416_s28 = sphi %s1484_s28, %s1819_s28   ;;  %s1412_s27 = sphi %s1482_s27, %s1832_s27   ;;  %s1408_s26 = sphi %s1480_s26, %s1831_s26   ;;  %s1404_s25 = sphi %s1478_s25, %s1830_s25   ;;  %s1400_s24 = sphi %s1476_s24, %s1829_s24   ;;  %s1396_s23 = sphi %s1474_s23, %s1828_s23   ;;  %s1392_s22 = sphi %s1472_s22, %s1827_s22   ;;  %s1388_s21 = sphi %s1470_s21, %s1826_s21   ;;  %s1384_s20 = sphi %s1468_s20, %s1825_s20   ;;  %s1380_s19 = sphi %s1466_s19, %s1824_s19   ;;  %s1376_s18 = sphi %s1464_s18, %s1823_s18  }
  0x10   : > { %1792 = sst [smem:[#allocation8_spill]] %s1412_s27  ;;  %p28_p0 = scmp.ge.s32.totalorder %s27_s9, 2 }
  0x11   : > { %1793 = sst [smem:[#allocation9_spill]] %s1416_s28  ;;  %s30_s10 = sadd.s32 1, %s1424_s30 }
  0x12   : > { %1794 = sst [smem:[#allocation10_spill]] %s1428_s6  ;;  %s34_s11 = sadd.s32 1, %s1428_s6 }
  0x13   : > { %s43_s12 = sadd.s32 1, %s1404_s25  ;;  %s1836_s9 = smov (%p28_p0, %s27_s9), 0 }
  0x14   : > { %1795 = sst [smem:[#allocation11_spill]] %s1836_s9  ;;  %s1838_s10 = smov (!%p28_p0, %s30_s10), %s1424_s30 }
  0x15   : > { %s39_s13 = ssub.s32 %s1420_s29, %s1836_s9  ;;  %p50_p1 = scmp.ne.s32.totalorder %s1404_s25, %s1400_s24 }
  0x16   : > { %p32_p2 = scmp.ge.s32.totalorder %s1838_s10, 3  ;;  %p51_p3 = scmp.eq.s32.totalorder %s1432_s7, 0 }
  0x17   : > { %s71_s14 = sadd.s32 1, %s1396_s23  ;;  %p78_p4 = scmp.ne.s32.totalorder %s1396_s23, %s1392_s22 }
  0x18   : > { %s1840_s10 = smov (%p32_p2, %s1838_s10), 0  ;;  %s1842_s11 = smov (!%p32_p2, %s34_s11), %s1428_s6 }
  0x19   : > { %1796 = sst [smem:[#allocation12_spill]] %s1840_s10  ;;  %p1560_p5 = por %p51_p3, %p50_p1 }
  0x1a   : > { %s67_s16 = ssub.s32 %s1424_s30, %s1840_s10  ;;  %p36_p6 = scmp.ge.s32.totalorder %s1842_s11, 3 }
  0x1b   : > { %s68_s17 = sor.u32 %s67_s16, %s39_s13  ;;  %p1568_p8 = por %p78_p4, %p51_p3 }
  0x1c   : > { %p69_p7 = scmp.eq.s32.totalorder %s68_s17, 0  ;;  %s1844_s11 = smov (%p36_p6, %s1842_s11), 0 }
  0x1d   : > { %1799 = sst [smem:[#allocation13_spill]] %s1844_s11  ;;  %s38_s5 = ssub.s32 %s1428_s6, %s1844_s11 }
  0x1e   : > { %s1575_s9 = scalar_select %p69_p7, %s1396_s23, %s71_s14  }
  0x1f   : > { %p121_p9 = scmp.eq.s32.totalorder %s67_s16, 0  ;;  %s40_s10 = sor.u32 %s39_s13, %s38_s5 }
  0x20   : > { %s123_s26 = sadd.s32 1, %s1388_s21  ;;  %p41_p10 = scmp.eq.s32.totalorder %s40_s10, 0 }
  0x21   : > { %p130_p11 = scmp.ne.s32.totalorder %s1388_s21, %s1384_s20  ;;  %s174_s27 = sor.u32 %s67_s16, %s38_s5 }
  0x22   : > { %s1583_s17 = scalar_select %p121_p9, %s1388_s21, %s123_s26  }
  0x23   : > { %s1586_s2 = scalar_select %p41_p10, %s1404_s25, %s43_s12  }
  0x24   : > { %p1590_p12 = por %p130_p11, %p51_p3  ;;  %p175_p13 = scmp.eq.s32.totalorder %s174_s27, 0 }
  0x25   : > { %1800 = sst [smem:[#allocation14_spill]] %s1586_s2  ;;  %s177_s28 = sadd.s32 1, %s1380_s19 }
  0x26   : > { %p187_p0 = scmp.ne.s32.totalorder %s1380_s19, %s1376_s18  ;;  %s1802_s14 = sadd.s32 4294967295, %s1432_s7  }
  0x27   : > { %p188_p1 = scmp.eq.s32.totalorder %s1802_s14, 17  ;;  %p1037_p4 = scmp.ge.s32.totalorder %s1432_s7, 18 }
  0x28   : > { %s1600_s11 = scalar_select %p175_p13, %s1380_s19, %s177_s28  }
  0x29   : > { %p1602_p2 = por %p188_p1, %p187_p0  ;;  %210 = sbr.rel (%p1037_p4) target bundleno = 112 (0x70), region = 16 }
  0x2e   : > { %213 = sbr.rel (!%p1560_p5) target bundleno = 60 (0x3c), region = 20  ;;  %s215_s5 = sand.u32 (%p1560_p5), 1, %s1404_s25  }
  0x2f   : > { %s1143_s26 = sshll.u32 (%p1560_p5), %s1428_s6, 3  ;;  %s1038_s27 = sshll.u32 (%p1560_p5), %s215_s5, 4 }
  0x30   : > { %s220_s12 = sadd.s32 (%p1560_p5), %s1420_s29, %s1143_s26  ;;  %s1804_s0 = sld [smem:[#allocation15_spill]] (%p1560_p5) }
  0x31   : > { %s1041_s13 = sshll.u32 (%p1560_p5), %s220_s12, 2  ;;  %s217_s2 = scalar_lea.vmem (%p1560_p5), [#allocation3], %s1038_s27 }
  0x36   : > { %s222_s14 = scalar_lea.vmem %s1804_s0, %s1041_s13 }
  0x37   : > { %v239_v0 = vld [vmem:[%s222_s14] sm:$0xf]  ;;  %v241_v1 = vld [vmem:[%s222_s14 + $0x8] sm:$0xf]  ;;  %v243_v2 = vld [vmem:[%s222_s14 + $0x10] sm:$0xf] }
  0x38   : > { %240 = vst [vmem:[%s217_s2] sm:$0xf] %v239_v0  ;;  %v245_v3 = vld [vmem:[%s222_s14 + $0x18] sm:$0xf] }
  0x39   : > { %242 = vst [vmem:[%s217_s2 + $0x4] sm:$0xf] %v241_v1 }
  0x3a   : > { %244 = vst [vmem:[%s217_s2 + $0x8] sm:$0xf] %v243_v2 }
  0x3b   : > { %246 = vst [vmem:[%s217_s2 + $0xc] sm:$0xf] %v245_v3 }
  0x3c PF: > { %278 = sbr.rel (!%p1568_p8) target bundleno = 86 (0x56), region = 61  ;;  %s280_s15 = sand.u32 (%p1568_p8), 1, %s1396_s23  }
  0x3d   : > { %s1191_s5 = smul.u32 (%p1568_p8), 48, %s1420_s29  ;;  %s1042_s26 = sshll.u32 (%p1568_p8), %s280_s15, 6 }
  0x3e   : > { %s1805_s1 = sld [smem:[#allocation16_spill]] (%p1568_p8)  ;;  %s282_s2 = scalar_lea.vmem (%p1568_p8), [#allocation4], %s1042_s26 }
  0x3f   : > { %s285_s12 = sadd.s32 (%p1568_p8), %s1424_s30, %s1191_s5 }
  0x40   : > { %s1045_s13 = sshll.u32 (%p1568_p8), %s285_s12, 2 }
  0x44   : > { %s1623_s27 = scalar_lea.vmem %s1805_s1, %s1045_s13 }
  0x45   : > { %v304_v4 = vld [vmem:[%s1623_s27] sm:$0xf]  ;;  %v306_v5 = vld [vmem:[%s1623_s27 + $0xc] sm:$0xf]  ;;  %v308_v6 = vld [vmem:[%s1623_s27 + $0x18] sm:$0xf] }
  0x46   : > { %305 = vst [vmem:[%s282_s2] sm:$0xf] %v304_v4  ;;  %v310_v7 = vld [vmem:[%s1623_s27 + $0x24] sm:$0xf]  ;;  %v312_v8 = vld [vmem:[%s1623_s27 + $0x30] sm:$0xf] }
  0x47   : > { %307 = vst [vmem:[%s282_s2 + $0x4] sm:$0xf] %v306_v5  ;;  %v314_v9 = vld [vmem:[%s1623_s27 + $0x3c] sm:$0xf]  ;;  %v316_v10 = vld [vmem:[%s1623_s27 + $0x48] sm:$0xf] }
  0x48   : > { %309 = vst [vmem:[%s282_s2 + $0x8] sm:$0xf] %v308_v6  ;;  %v318_v11 = vld [vmem:[%s1623_s27 + $0x54] sm:$0xf]  ;;  %v320_v12 = vld [vmem:[%s1623_s27 + $0x60] sm:$0xf] }
  0x49   : > { %311 = vst [vmem:[%s282_s2 + $0xc] sm:$0xf] %v310_v7  ;;  %v322_v13 = vld [vmem:[%s1623_s27 + $0x6c] sm:$0xf]  ;;  %v324_v14 = vld [vmem:[%s1623_s27 + $0x78] sm:$0xf] }
  0x4a   : > { %313 = vst [vmem:[%s282_s2 + $0x10] sm:$0xf] %v312_v8  ;;  %v326_v15 = vld [vmem:[%s1623_s27 + $0x84] sm:$0xf]  ;;  %v328_v16 = vld [vmem:[%s1623_s27 + $0x90] sm:$0xf] }
  0x4b   : > { %315 = vst [vmem:[%s282_s2 + $0x14] sm:$0xf] %v314_v9  ;;  %v330_v17 = vld [vmem:[%s1623_s27 + $0x9c] sm:$0xf]  ;;  %v332_v18 = vld [vmem:[%s1623_s27 + $0xa8] sm:$0xf] }
  0x4c   : > { %317 = vst [vmem:[%s282_s2 + $0x18] sm:$0xf] %v316_v10  ;;  %v334_v19 = vld [vmem:[%s1623_s27 + $0xb4] sm:$0xf] }
  0x4d   : > { %319 = vst [vmem:[%s282_s2 + $0x1c] sm:$0xf] %v318_v11 }
  0x4e   : > { %321 = vst [vmem:[%s282_s2 + $0x20] sm:$0xf] %v320_v12 }
  0x4f   : > { %323 = vst [vmem:[%s282_s2 + $0x24] sm:$0xf] %v322_v13 }
  0x50   : > { %325 = vst [vmem:[%s282_s2 + $0x28] sm:$0xf] %v324_v14 }
  0x51   : > { %327 = vst [vmem:[%s282_s2 + $0x2c] sm:$0xf] %v326_v15 }
  0x52   : > { %329 = vst [vmem:[%s282_s2 + $0x30] sm:$0xf] %v328_v16 }
  0x53   : > { %331 = vst [vmem:[%s282_s2 + $0x34] sm:$0xf] %v330_v17 }
  0x54   : > { %333 = vst [vmem:[%s282_s2 + $0x38] sm:$0xf] %v332_v18 }
  0x55   : > { %335 = vst [vmem:[%s282_s2 + $0x3c] sm:$0xf] %v334_v19 }
  0x56 PF: > { %400 = sbr.rel (!%p1590_p12) target bundleno = 112 (0x70), region = 106  ;;  %s402_s8 = sand.u32 (%p1590_p12), 1, %s1388_s21  }
  0x57   : > { %s1047_s14 = sshll.u32 (%p1590_p12), %s1424_s30, 2  ;;  %s1046_s15 = sshll.u32 (%p1590_p12), %s402_s8, 6 }
  0x58   : > { %s1806_s3 = sld [smem:[#allocation18_spill]] (%p1590_p12)  ;;  %s404_s4 = scalar_lea.vmem (%p1590_p12), [#allocation5], %s1046_s15 }
  0x5e   : > { %s1648_s12 = scalar_lea.vmem %s1806_s3, %s1047_s14 }
  0x5f   : > { %v423_v20 = vld [vmem:[%s1648_s12] sm:$0xf]  ;;  %v425_v21 = vld [vmem:[%s1648_s12 + $0xc] sm:$0xf]  ;;  %v427_v22 = vld [vmem:[%s1648_s12 + $0x18] sm:$0xf] }
  0x60   : > { %424 = vst [vmem:[%s404_s4] sm:$0xf] %v423_v20  ;;  %v429_v23 = vld [vmem:[%s1648_s12 + $0x24] sm:$0xf]  ;;  %v431_v24 = vld [vmem:[%s1648_s12 + $0x30] sm:$0xf] }
  0x61   : > { %426 = vst [vmem:[%s404_s4 + $0x4] sm:$0xf] %v425_v21  ;;  %v433_v25 = vld [vmem:[%s1648_s12 + $0x3c] sm:$0xf]  ;;  %v435_v26 = vld [vmem:[%s1648_s12 + $0x48] sm:$0xf] }
  0x62   : > { %428 = vst [vmem:[%s404_s4 + $0x8] sm:$0xf] %v427_v22  ;;  %v437_v27 = vld [vmem:[%s1648_s12 + $0x54] sm:$0xf]  ;;  %v439_v28 = vld [vmem:[%s1648_s12 + $0x60] sm:$0xf] }
  0x63   : > { %430 = vst [vmem:[%s404_s4 + $0xc] sm:$0xf] %v429_v23  ;;  %v441_v29 = vld [vmem:[%s1648_s12 + $0x6c] sm:$0xf]  ;;  %v443_v30 = vld [vmem:[%s1648_s12 + $0x78] sm:$0xf] }
  0x64   : > { %432 = vst [vmem:[%s404_s4 + $0x10] sm:$0xf] %v431_v24  ;;  %v445_v31 = vld [vmem:[%s1648_s12 + $0x84] sm:$0xf]  ;;  %v447_v32 = vld [vmem:[%s1648_s12 + $0x90] sm:$0xf] }
  0x65   : > { %434 = vst [vmem:[%s404_s4 + $0x14] sm:$0xf] %v433_v25  ;;  %v449_v33 = vld [vmem:[%s1648_s12 + $0x9c] sm:$0xf]  ;;  %v451_v34 = vld [vmem:[%s1648_s12 + $0xa8] sm:$0xf] }
  0x66   : > { %436 = vst [vmem:[%s404_s4 + $0x18] sm:$0xf] %v435_v26  ;;  %v453_v35 = vld [vmem:[%s1648_s12 + $0xb4] sm:$0xf] }
  0x67   : > { %438 = vst [vmem:[%s404_s4 + $0x1c] sm:$0xf] %v437_v27 }
  0x68   : > { %440 = vst [vmem:[%s404_s4 + $0x20] sm:$0xf] %v439_v28 }
  0x69   : > { %442 = vst [vmem:[%s404_s4 + $0x24] sm:$0xf] %v441_v29 }
  0x6a   : > { %444 = vst [vmem:[%s404_s4 + $0x28] sm:$0xf] %v443_v30 }
  0x6b   : > { %446 = vst [vmem:[%s404_s4 + $0x2c] sm:$0xf] %v445_v31 }
  0x6c   : > { %448 = vst [vmem:[%s404_s4 + $0x30] sm:$0xf] %v447_v32 }
  0x6d   : > { %450 = vst [vmem:[%s404_s4 + $0x34] sm:$0xf] %v449_v33 }
  0x6e   : > { %452 = vst [vmem:[%s404_s4 + $0x38] sm:$0xf] %v451_v34 }
  0x6f   : > { %454 = vst [vmem:[%s404_s4 + $0x3c] sm:$0xf] %v453_v35 }
  0x70 PF: > { %p1048_p3 = scmp.ge.s32.totalorder %s1432_s7, 1  ;;  %p515_p5 = scmp.lt.s32.totalorder %s1432_s7, 19 }
  0x72   : > { %p516_p6 = pnand %p1048_p3, %p515_p5 }
  0x73   : > { %s1807_s13 = sld [smem:[#allocation9_spill]] (!%p516_p6)  ;;  %s522_s16 = sand.u32 (!%p516_p6), 1, %s1400_s24  }
  0x74   : > { %519 = sbr.rel (%p516_p6) target bundleno = 505 (0x1f9), region = 151  ;;  %s1808_s28 = sld [smem:[#allocation8_spill]] (!%p516_p6) }
  0x75   : > { %s529_s27 = sand.u32 (!%p516_p6), 1, %s1392_s22   ;;  %s1670_s2 = sshll.u32 (!%p516_p6), %s522_s16, 4 }
  0x76   : > { %s1050_s8 = sshll.u32 (!%p516_p6), %s529_s27, 6  ;;  %s536_s14 = sand.u32 (!%p516_p6), 1, %s1384_s20  }
  0x77   : > { %s575_s15 = sand.u32 (!%p516_p6), 1, %s1376_s18   ;;  %s1051_s5 = sshll.u32 (!%p516_p6), %s536_s14, 6 }
  0x78   : > { %s1052_s26 = sshll.u32 (!%p516_p6), %s575_s15, 4  ;;  %s1809_s1 = sld [smem:[#allocation19_spill]] (!%p516_p6) }
  0x79   : > { %s1053_s12 = sshll.u32 %s1807_s13, 2  ;;  %s1810_s6 = sld [smem:[#allocation17_spill]] }
  0x7a   : > { %p586_p7 = scmp.lt.s32.totalorder %s1808_s28, 2  ;;  %p581_p8 = scmp.lt.s32.totalorder %s1053_s12, 11 }
  0x7b   : > { %s524_s20 = scalar_lea.vmem [#allocation3], %s1670_s2  ;;  %s1687_s18 = scalar_lea.vmem [#allocation4], %s1050_s8 }
  0x7c   : > { %s1846_s28 = smov (!%p586_p7, %s1808_s28), 2  ;;  %s1848_s12 = smov (!%p581_p8, %s1053_s12), 11 }
  0x7d   : > { %s1054_s22 = sshll.u32 %s1848_s12, 2  ;;  %s538_s14 = scalar_lea.vmem [#allocation5], %s1051_s5 }
  0x7e   : > { %s588_s24 = scalar_lea.vmem %s1809_s1, %s1846_s28  ;;  %s1689_s13 = scalar_lea.vmem [#allocation6], %s1052_s26 }
  0x7f   : > { %s584_s27 = scalar_lea.vmem %s1810_s6, %s1054_s22  ;;  %s1811_s15 = sld [smem:[#allocation7_spill]] }
  0x85   : > { %p1055_p9 = scmp.ne.s32.totalorder %s1811_s15, 0 }
  0x87   : > { %593 = sbr.rel (%p1055_p9) target bundleno = 310 (0x136), region = 167 }
  0x8c   : > { %v1153_v36 = vld [vmem:[%s538_s14 + $0x38] sm:$0xff]  ;;  %v1152_v37 = vld [vmem:[%s538_s14 + $0x30] sm:$0xff]  ;;  %v1151_v38 = vld [vmem:[%s538_s14 + $0x28] sm:$0xff] }
  0x8d   : > { %675 = vmatpush.bf16.msra.mxu0 %v1153_v36  ;;  %1175 = vmatpush.bf16.msra.mxu1 %v1153_v36  ;;  %v1150_v39 = vld [vmem:[%s538_s14 + $0x20] sm:$0xff]  ;;  %v1149_v40 = vld [vmem:[%s538_s14 + $0x18] sm:$0xff]  ;;  %v1148_v41 = vld [vmem:[%s538_s14 + $0x10] sm:$0xff] }
  0x8e   : > { %v1147_v42 = vld [vmem:[%s538_s14 + $0x8] sm:$0xff]  ;;  %v1146_v43 = vld [vmem:[%s538_s14] sm:$0xff]  ;;  %v1144_v44 = vld [vmem:[%s584_s27] sm:$0xff] }
  0x8f   : > { %v1145_v45 = vld [vmem:[%s584_s27 + $0x8] sm:$0xff]  ;;  %v1313_v46 = vld [vmem:[%s588_s24] ss:$0 sm:$0xff] }
  0x91   : > { %676 = vmatpush.bf16.msra.mxu0 %v1152_v37  ;;  %1176 = vmatpush.bf16.msra.mxu1 %v1152_v37 }
  0x95   : > { %677 = vmatpush.bf16.msra.mxu0 %v1151_v38  ;;  %1177 = vmatpush.bf16.msra.mxu1 %v1151_v38 }
  0x99   : > { %678 = vmatpush.bf16.msra.mxu0 %v1150_v39  ;;  %1178 = vmatpush.bf16.msra.mxu1 %v1150_v39 }
  0x9d   : > { %679 = vmatpush.bf16.msra.mxu0 %v1149_v40  ;;  %1179 = vmatpush.bf16.msra.mxu1 %v1149_v40 }
  0xa1   : > { %680 = vmatpush.bf16.msra.mxu0 %v1148_v41  ;;  %1180 = vmatpush.bf16.msra.mxu1 %v1148_v41 }
  0xa5   : > { %681 = vmatpush.bf16.msra.mxu0 %v1147_v42  ;;  %1181 = vmatpush.bf16.msra.mxu1 %v1147_v42 }
  0xa9   : > { %682 = vmatpush.bf16.msra.mxu0 %v1146_v43  ;;  %1182 = vmatpush.bf16.msra.mxu1 %v1146_v43 }
  0xac   : > { %683 = vmatmul.bf16.vlgmr.msra.gmra.mxu0 %v1144_v44  ;;  %688 = vmatmul.bf16.vlgmr.msra.gmra.mxu1 %v1145_v45 }
 0x129   : > { %v684_v47 = vpop.f32.mrf.mxu0  ;;  %v689_v48 = vpop.f32.mrf.mxu1 }
 0x12a   : > { %v697_v49 = vadd.f32 %v1313_v46, %v684_v47  ;;  %v699_v50 = vadd.f32 %v1313_v46, %v689_v48 }
 0x12c   : > { %701 = vst [vmem:[#allocation2 + $0x10] sm:$0xff] %v697_v49 }
 0x12d   : > { %703 = vst [vmem:[#allocation2 + $0x18] sm:$0xff] %v699_v50 }
 0x131   : > { %v686_v51 = vpop.f32.mrf.mxu0  ;;  %v691_v52 = vpop.f32.mrf.mxu1 }
 0x132   : > { %v698_v53 = vadd.f32 %v1313_v46, %v686_v51  ;;  %v700_v54 = vadd.f32 %v1313_v46, %v691_v52 }
 0x134   : > { %702 = vst [vmem:[#allocation2] sm:$0xff] %v698_v53 }
 0x135   : > { %704 = vst [vmem:[#allocation2 + $0x8] sm:$0xff] %v700_v54 }
 0x136 PF: > { %v1163_v55 = vld [vmem:[%s1687_s18 + $0x38] sm:$0xff]  ;;  %v1162_v56 = vld [vmem:[%s1687_s18 + $0x30] sm:$0xff]  ;;  %v1161_v57 = vld [vmem:[%s1687_s18 + $0x28] sm:$0xff]  ;;  %s1813_s6 = sld [smem:[#allocation7_spill]] }
 0x137   : > { %789 = vmatpush.bf16.msra.mxu0 %v1163_v55  ;;  %1183 = vmatpush.bf16.msra.mxu1 %v1163_v55  ;;  %v1160_v58 = vld [vmem:[%s1687_s18 + $0x20] sm:$0xff]  ;;  %v1159_v59 = vld [vmem:[%s1687_s18 + $0x18] sm:$0xff]  ;;  %v1158_v60 = vld [vmem:[%s1687_s18 + $0x10] sm:$0xff] }
 0x138   : > { %v1157_v61 = vld [vmem:[%s1687_s18 + $0x8] sm:$0xff]  ;;  %v1156_v62 = vld [vmem:[%s1687_s18] sm:$0xff]  ;;  %v705_v1 = vld [vmem:[#allocation2 + $0x10] sm:$0xff] }
 0x139   : > { %v1154_v63 = vld [vmem:[%s524_s20] sm:$0xff]  ;;  %v1155_v0 = vld [vmem:[%s524_s20 + $0x8] sm:$0xff] }
 0x13a   : > { %v707_v2 = vld [vmem:[#allocation2 + $0x18] sm:$0xff] }
 0x13b   : > { %790 = vmatpush.bf16.msra.mxu0 %v1162_v56  ;;  %1184 = vmatpush.bf16.msra.mxu1 %v1162_v56  ;;  %v706_v7 = vld [vmem:[#allocation2] sm:$0xff] }
 0x13c   : > { %v708_v8 = vld [vmem:[#allocation2 + $0x8] sm:$0xff]  ;;  %p1136_p10 = scmp.ne.s32.totalorder %s1813_s6, 1 }
 0x13f   : > { %791 = vmatpush.bf16.msra.mxu0 %v1161_v57  ;;  %1185 = vmatpush.bf16.msra.mxu1 %v1161_v57 }
 0x143   : > { %792 = vmatpush.bf16.msra.mxu0 %v1160_v58  ;;  %1186 = vmatpush.bf16.msra.mxu1 %v1160_v58 }
 0x147   : > { %793 = vmatpush.bf16.msra.mxu0 %v1159_v59  ;;  %1187 = vmatpush.bf16.msra.mxu1 %v1159_v59 }
 0x14b   : > { %794 = vmatpush.bf16.msra.mxu0 %v1158_v60  ;;  %1188 = vmatpush.bf16.msra.mxu1 %v1158_v60 }
 0x14f   : > { %795 = vmatpush.bf16.msra.mxu0 %v1157_v61  ;;  %1189 = vmatpush.bf16.msra.mxu1 %v1157_v61 }
 0x153   : > { %796 = vmatpush.bf16.msra.mxu0 %v1156_v62  ;;  %1190 = vmatpush.bf16.msra.mxu1 %v1156_v62 }
 0x156   : > { %797 = vmatmul.bf16.vlgmr.msra.gmra.mxu0 %v1154_v63  ;;  %802 = vmatmul.bf16.vlgmr.msra.gmra.mxu1 %v1155_v0 }
 0x1d3   : > { %v798_v3 = vpop.f32.mrf.mxu0  ;;  %v803_v4 = vpop.f32.mrf.mxu1 }
 0x1d4   : > { %v808_v5 = vadd.f32 %v798_v3, %v705_v1  ;;  %v810_v6 = vadd.f32 %v803_v4, %v707_v2 }
 0x1d6   : > { %812 = vst [vmem:[#allocation2 + $0x10] sm:$0xff] %v808_v5 }
 0x1d7   : > { %814 = vst [vmem:[#allocation2 + $0x18] sm:$0xff] %v810_v6 }
 0x1db   : > { %v800_v9 = vpop.f32.mrf.mxu0  ;;  %v805_v10 = vpop.f32.mrf.mxu1  ;;  %819 = sbr.rel (%p1136_p10) target bundleno = 490 (0x1ea), region = 171 }
 0x1dc   : > { %v809_v11 = vadd.f32 %v800_v9, %v706_v7  ;;  %v811_v12 = vadd.f32 %v805_v10, %v708_v8 }
 0x1de   : > { %813 = vst [vmem:[#allocation2] sm:$0xff] %v809_v11 }
 0x1df   : > { %815 = vst [vmem:[#allocation2 + $0x8] sm:$0xff] %v811_v12 }
 0x1e0   : > { %v820_v13 = vld [vmem:[#allocation2 + $0x10] sm:$0xff]  ;;  %v822_v15 = vld [vmem:[#allocation2 + $0x18] sm:$0xff] }
 0x1e5   : > { %v821_v14 = vld [vmem:[#allocation2] sm:$0xff] }
 0x1e6   : > { %v1167_v16 = vpack.c.bf16 %v821_v14, %v820_v13  ;;  %v823_v17 = vld [vmem:[#allocation2 + $0x8] sm:$0xff] }
 0x1e7   : > { %v1172_v18 = vpack.c.bf16 %v823_v17, %v822_v15 }
 0x1e8   : > { %1168 = vst [vmem:[%s1689_s13] sm:$0xff] %v1167_v16  }
 0x1e9   : > { %1174 = vst [vmem:[%s1689_s13 + $0x8] sm:$0xff] %v1172_v18  }
 0x1ea PF: > { %838 = sbr.rel (!%p1602_p2) target bundleno = 505 (0x1f9), region = 175  ;;  %s1814_s28 = sld [smem:[#allocation9_spill]] (%p1602_p2) }
 0x1eb   : > { %s1815_s2 = sld [smem:[#allocation8_spill]] (%p1602_p2) }
 0x1ec   : > { %s1816_s24 = sld [smem:[#allocation20_spill]] (%p1602_p2) }
 0x1ef   : > { %v860_v19 = vld [vmem:[%s1689_s13] sm:$0xf]  ;;  %v862_v20 = vld [vmem:[%s1689_s13 + $0x4] sm:$0xf] }
 0x1f0   : > { %s1192_s8 = smul.u32 12, %s1814_s28  ;;  %v864_v21 = vld [vmem:[%s1689_s13 + $0x8] sm:$0xf]  ;;  %v866_v22 = vld [vmem:[%s1689_s13 + $0xc] sm:$0xf] }
 0x1f2   : > { %s841_s5 = sadd.s32 %s1815_s2, %s1192_s8 }
 0x1f3   : > { %s1140_s26 = sshll.u32 %s841_s5, 2 }
 0x1f4   : > { %s843_s22 = scalar_lea.vmem %s1816_s24, %s1140_s26 }
 0x1f5   : > { %861 = vst [vmem:[%s843_s22] sm:$0xf] %v860_v19 }
 0x1f6   : > { %863 = vst [vmem:[%s843_s22 + $0xc] sm:$0xf] %v862_v20 }
 0x1f7   : > { %865 = vst [vmem:[%s843_s22 + $0x18] sm:$0xf] %v864_v21 }
 0x1f8   : > { %867 = vst [vmem:[%s843_s22 + $0x24] sm:$0xf] %v866_v22 }
 0x1f9 PF: > { %s15_s7 = sadd.s32 1, %s1432_s7   ;;  %s1818_s16 = sld [smem:[#allocation14_spill]] }
 0x1fa   : > { %p1724_p11 = scmp.ge.s32.totalorder %s15_s7, 20   ;;  %s1819_s28 = sld [smem:[#allocation10_spill]] }
 0x1fb   : > { %s1820_s14 = sld [smem:[#allocation11_spill]]  ;;  %s1823_s18 = smov %s1380_s19 }
 0x1fc   : > { %s1821_s13 = sld [smem:[#allocation12_spill]]  ;;  %s1824_s19 = smov %s1600_s11 }
 0x1fd   : > { %s1822_s6 = sld [smem:[#allocation13_spill]]  ;;  %s1825_s20 = smov %s1388_s21 }
 0x1fe   : > { %s1826_s21 = smov %s1583_s17  ;;  %s1827_s22 = smov %s1396_s23 }
 0x1ff   : > { %s1828_s23 = smov %s1575_s9  ;;  %s1829_s24 = smov %s1404_s25 }
 0x200   : > { %s1830_s25 = smov %s1818_s16  ;;  %s1831_s26 = smov %s1420_s29 }
 0x201   : > { %s1832_s27 = smov %s1424_s30  ;;  %s1833_s29 = smov %s1820_s14 }
 0x202   : > { %s1834_s30 = smov %s1821_s13  ;;  %14 = sbr.rel (!%p1724_p11) target bundleno = 15 (0xf), region = 269 }

</bundles_post_ra>
